<compile_context>
chip_gen: v6e
topology: v6e:2x2x1
jax: 0.10.0
libtpu: 0.0.40
codegen_flags: <defaults>
</compile_context>

<pallas_src>
import functools

import jax
import jax.numpy as jnp
from jax.experimental import pallas as pl
from jax.experimental.pallas import tpu as pltpu


LEAKY_SLOPE = 0.2


def _round_up(n, m):
    return ((n + m - 1) // m) * m


def _pad_2d(a, rows, cols):
    return jnp.pad(a, ((0, rows - a.shape[0]), (0, cols - a.shape[1])))


def generator_kernel(x_ref,
                     w1_ref, b1_ref,
                     w2_ref, b2_ref,
                     w3_ref, b3_ref,
                     w4_ref, b4_ref,
                     o_ref):
    """One batch tile: 4 fused (bf16 x bf16 -> f32) matmuls + activations."""

    def linear(h_bf16, w_ref, b_ref):
        # bf16 operands on the MXU, f32 accumulation, f32 bias add.
        return jnp.dot(h_bf16, w_ref[...],
                       preferred_element_type=jnp.float32) + b_ref[...]

    def leaky(h):
        # max(x, 0.2*x) == leaky_relu(x, 0.2): single VPU max vs. cmp+select.
        return jnp.maximum(h, LEAKY_SLOPE * h)

    h = leaky(linear(x_ref[...], w1_ref, b1_ref)).astype(jnp.bfloat16)  # dropout(eval)=id
    h = leaky(linear(h, w2_ref, b2_ref)).astype(jnp.bfloat16)           # dropout(eval)=id
    h = leaky(linear(h, w3_ref, b3_ref)).astype(jnp.bfloat16)           # dropout(eval)=id
    o_ref[...] = jnp.tanh(linear(h, w4_ref, b4_ref)).astype(o_ref.dtype)


def prepare_params(params):
    """Pad every feature dim to a multiple of 128 lanes and cast ONCE.

    Zero padding is exact (zero activation columns x zero weight rows contribute
    nothing). Weights -> bf16 (MXU-native, half the DMA bytes), biases -> f32
    (added to the f32 accumulator). Returns (padded_pytree, d_out).
    """
    d_in, d1 = params["w1"].shape
    d2 = params["w2"].shape[1]
    d3 = params["w3"].shape[1]
    d_out = params["w4"].shape[1]
    p_in, p1, p2, p3, p_out = (_round_up(d, 128) for d in (d_in, d1, d2, d3, d_out))

    padded = {
        "w1": _pad_2d(params["w1"], p_in, p1).astype(jnp.bfloat16),
        "w2": _pad_2d(params["w2"], p1, p2).astype(jnp.bfloat16),
        "w3": _pad_2d(params["w3"], p2, p3).astype(jnp.bfloat16),
        "w4": _pad_2d(params["w4"], p3, p_out).astype(jnp.bfloat16),
        "b1": _pad_2d(params["b1"], 1, p1).astype(jnp.float32),
        "b2": _pad_2d(params["b2"], 1, p2).astype(jnp.float32),
        "b3": _pad_2d(params["b3"], 1, p3).astype(jnp.float32),
        "b4": _pad_2d(params["b4"], 1, p_out).astype(jnp.float32),
    }
    return jax.tree_util.tree_map(jax.block_until_ready, padded), d_out


@functools.partial(jax.jit, static_argnames=("d_out", "tile_b"))
def generator_forward(x, padded_params, d_out, tile_b=512):
    """x: [B, input_size] float32. padded_params: from prepare_params().

    Returns [B, output_size] bfloat16 (tanh range is exact in bf16); cast to f32
    outside if the consumer needs it.
    """
    B, _ = x.shape
    w1, w2, w3, w4 = (padded_params[k] for k in ("w1", "w2", "w3", "w4"))
    b1, b2, b3, b4 = (padded_params[k] for k in ("b1", "b2", "b3", "b4"))
    p_in, p1 = w1.shape
    p2 = w2.shape[1]
    p3 = w3.shape[1]
    p_out = w4.shape[1]

    # Batch tile: multiple of 16 (bf16 packs 16 rows / vreg), capped at half the
    # padded batch so the grid has >= 2 iterations when B permits (second v7x
    # TensorCore + x/out prefetch overlap). tile_b=512 amortizes per-step
    # overhead on the 128 MiB (v5e/v6e) parts.
    b16 = _round_up(B, 16)
    TILE_B = min(tile_b, b16)
    if b16 >= 32:
        TILE_B = min(TILE_B, _round_up((b16 + 1) // 2, 16))
    B_pad = _round_up(B, TILE_B)
    n_tiles = B_pad // TILE_B

    xp = _pad_2d(x, B_pad, p_in).astype(jnp.bfloat16)

    def resident(shape):
        # Constant index_map -> block stays VMEM-resident across grid steps;
        # single-buffered so it doesn't burn 2x VMEM for data that never changes.
        return pl.BlockSpec(shape, lambda i: (0, 0), pipeline_mode=pl.Buffered(1))

    in_specs = [
        pl.BlockSpec((TILE_B, p_in), lambda i: (i, 0)),   # x tile (double-buffered)
        resident((p_in, p1)), resident((1, p1)),          # fc1
        resident((p1, p2)), resident((1, p2)),            # fc2
        resident((p2, p3)), resident((1, p3)),            # fc3
        resident((p3, p_out)), resident((1, p_out)),      # fc4
    ]
    out_spec = pl.BlockSpec((TILE_B, p_out), lambda i: (i, 0))

    # Explicit VMEM budget: single-buffered bf16 weights + f32 biases
    # + 2x bf16 x-tiles + 2x bf16 out-tiles + f32 intermediates, with 2x headroom,
    # clamped to v7x's 64 MiB physical VMEM.
    bytes_w = 2 * (p_in * p1 + p1 * p2 + p2 * p3 + p3 * p_out)
    bytes_b = 4 * (p1 + p2 + p3 + p_out)
    bytes_x = 2 * 2 * TILE_B * p_in
    bytes_o = 2 * 2 * TILE_B * p_out
    bytes_h = 4 * TILE_B * max(p1, p2, p3, p_out)
    vmem_limit = int(min(64 * 2**20,
                         max(2 * (bytes_w + bytes_b + bytes_x + bytes_o + bytes_h),
                             8 * 2**20)))

    out_padded = pl.pallas_call(
        generator_kernel,
        out_shape=jax.ShapeDtypeStruct((B_pad, p_out), jnp.bfloat16),
        grid=(n_tiles,),
        in_specs=in_specs,
        out_specs=out_spec,
        compiler_params=pltpu.CompilerParams(
            dimension_semantics=("parallel",),   # megacore split on v7x
            vmem_limit_bytes=vmem_limit,
        ),
    )(xp, w1, b1, w2, b2, w3, b3, w4, b4)

    return out_padded[:B, :d_out]


def init_params(key, input_size, output_size, hidden_dim):
    """Deterministic init. Weights stored as [in, out] (transposed vs. PyTorch)."""
    dims = [(input_size, hidden_dim),
            (hidden_dim, hidden_dim * 2),
            (hidden_dim * 2, hidden_dim * 4),
            (hidden_dim * 4, output_size)]
    params = {}
    for i, (din, dout) in enumerate(dims, start=1):
        key, kw, kb = jax.random.split(key, 3)
        bound = 1.0 / jnp.sqrt(din)  # matches nn.Linear default uniform bound
        params[f"w{i}"] = jax.random.uniform(
            kw, (din, dout), jnp.float32, -bound, bound)
        params[f"b{i}"] = jax.random.uniform(
            kb, (1, dout), jnp.float32, -bound, bound)
    return params


def _reference(x, p):
    """Pure-JAX reference using the same bf16-operand / f32-accumulation math."""
    def lin(h, w, b):
        return jnp.dot(h.astype(jnp.bfloat16), w.astype(jnp.bfloat16),
                       preferred_element_type=jnp.float32) + b
    h = lin(x, p["w1"], p["b1"])
    h = jnp.maximum(h, LEAKY_SLOPE * h)
    h = lin(h.astype(jnp.bfloat16), p["w2"], p["b2"])
    h = jnp.maximum(h, LEAKY_SLOPE * h)
    h = lin(h.astype(jnp.bfloat16), p["w3"], p["b3"])
    h = jnp.maximum(h, LEAKY_SLOPE * h)
    return jnp.tanh(lin(h.astype(jnp.bfloat16), p["w4"], p["b4"]))


if __name__ == "__main__":
    # Small shapes consistent with the module: latent z -> image vector.
    input_size = 16      # latent dim fed to the generator
    hidden_dim = 32
    output_size = 64     # (784 for real MNIST; kept small here)

    key = jax.random.PRNGKey(0)
    params = init_params(key, input_size, output_size, hidden_dim)
    padded_params, d_out = prepare_params(params)   # pad + cast ONCE, reused below

    for batch in (8, 48):   # 48 exercises the multi-tile (n_tiles >= 2) grid path
        key, kx = jax.random.split(key)
        x = jax.random.normal(kx, (batch, input_size), dtype=jnp.float32)

        out = generator_forward(x, padded_params, d_out)
        out = jax.block_until_ready(out)
        out_f32 = out.astype(jnp.float32)

        # Sanity: correct shape, tanh range.
        assert out.shape == (batch, output_size)
        assert out.dtype == jnp.bfloat16
        assert bool(jnp.all(jnp.abs(out_f32) <= 1.0))

        ref_out = _reference(x, params)
        max_err = float(jnp.max(jnp.abs(out_f32 - ref_out)))
        assert bool(jnp.allclose(out_f32, ref_out, atol=2e-2, rtol=2e-2)), max_err

    print("KERNEL_OK")
</pallas_src>

<mosaic_0001>
module attributes {stable_mosaic.version = 11 : i64} {
  func.func @generator_kernel(%arg0: i32, %arg1: memref<16x128xbf16, #tpu.memory_space<vmem>>, %arg2: memref<128x128xbf16, #tpu.memory_space<vmem>>, %arg3: memref<1x128xf32, #tpu.memory_space<vmem>>, %arg4: memref<128x128xbf16, #tpu.memory_space<vmem>>, %arg5: memref<1x128xf32, #tpu.memory_space<vmem>>, %arg6: memref<128x128xbf16, #tpu.memory_space<vmem>>, %arg7: memref<1x128xf32, #tpu.memory_space<vmem>>, %arg8: memref<128x128xbf16, #tpu.memory_space<vmem>>, %arg9: memref<1x128xf32, #tpu.memory_space<vmem>>, %arg10: memref<16x128xbf16, #tpu.memory_space<vmem>>) attributes {dimension_semantics = [#tpu.dimension_semantics<parallel>], iteration_bounds = array<i64: 1>, scalar_prefetch = 0 : i64, scratch_operands = 0 : i64, tpu.core_type = #tpu.core_type<tc>, window_params = [{transform_indices = @transform_0, window_bounds = array<i64: 16, 128>}, {pipeline_mode = #tpu.pipeline_mode<synchronous>, transform_indices = @transform_1, window_bounds = array<i64: 128, 128>}, {pipeline_mode = #tpu.pipeline_mode<synchronous>, transform_indices = @transform_2, window_bounds = array<i64: 1, 128>}, {pipeline_mode = #tpu.pipeline_mode<synchronous>, transform_indices = @transform_3, window_bounds = array<i64: 128, 128>}, {pipeline_mode = #tpu.pipeline_mode<synchronous>, transform_indices = @transform_4, window_bounds = array<i64: 1, 128>}, {pipeline_mode = #tpu.pipeline_mode<synchronous>, transform_indices = @transform_5, window_bounds = array<i64: 128, 128>}, {pipeline_mode = #tpu.pipeline_mode<synchronous>, transform_indices = @transform_6, window_bounds = array<i64: 1, 128>}, {pipeline_mode = #tpu.pipeline_mode<synchronous>, transform_indices = @transform_7, window_bounds = array<i64: 128, 128>}, {pipeline_mode = #tpu.pipeline_mode<synchronous>, transform_indices = @transform_8, window_bounds = array<i64: 1, 128>}, {transform_indices = @transform_9, window_bounds = array<i64: 16, 128>}]} {
    %c0 = arith.constant 0 : index
    %c0_0 = arith.constant 0 : index
    %0 = vector.load %arg1[%c0, %c0_0] : memref<16x128xbf16, #tpu.memory_space<vmem>>, vector<16x128xbf16>
    %c0_1 = arith.constant 0 : index
    %c0_2 = arith.constant 0 : index
    %1 = vector.load %arg2[%c0_1, %c0_2] : memref<128x128xbf16, #tpu.memory_space<vmem>>, vector<128x128xbf16>
    %cst = arith.constant dense<0.000000e+00> : vector<16x128xf32>
    %2 = tpu.matmul %0, %1, %cst {dimension_numbers = #tpu.dot_dimension_numbers<[1], [0], [0], [1], [0, 0, 1, 1], [], []>} : vector<16x128xbf16>, vector<128x128xbf16>, vector<16x128xf32> -> vector<16x128xf32>
    %c0_3 = arith.constant 0 : index
    %c0_4 = arith.constant 0 : index
    %3 = vector.load %arg3[%c0_3, %c0_4] : memref<1x128xf32, #tpu.memory_space<vmem>>, vector<1x128xf32>
    %4 = vector.broadcast %3 : vector<1x128xf32> to vector<16x128xf32>
    %5 = arith.addf %2, %4 : vector<16x128xf32>
    %cst_5 = arith.constant 2.000000e-01 : f32
    %6 = vector.broadcast %cst_5 : f32 to vector<16x128xf32>
    %7 = arith.mulf %6, %5 : vector<16x128xf32>
    %8 = arith.maximumf %5, %7 : vector<16x128xf32>
    %9 = arith.truncf %8 : vector<16x128xf32> to vector<16x128xbf16>
    %c0_6 = arith.constant 0 : index
    %c0_7 = arith.constant 0 : index
    %10 = vector.load %arg4[%c0_6, %c0_7] : memref<128x128xbf16, #tpu.memory_space<vmem>>, vector<128x128xbf16>
    %cst_8 = arith.constant dense<0.000000e+00> : vector<16x128xf32>
    %11 = tpu.matmul %9, %10, %cst_8 {dimension_numbers = #tpu.dot_dimension_numbers<[1], [0], [0], [1], [0, 0, 1, 1], [], []>} : vector<16x128xbf16>, vector<128x128xbf16>, vector<16x128xf32> -> vector<16x128xf32>
    %c0_9 = arith.constant 0 : index
    %c0_10 = arith.constant 0 : index
    %12 = vector.load %arg5[%c0_9, %c0_10] : memref<1x128xf32, #tpu.memory_space<vmem>>, vector<1x128xf32>
    %13 = vector.broadcast %12 : vector<1x128xf32> to vector<16x128xf32>
    %14 = arith.addf %11, %13 : vector<16x128xf32>
    %cst_11 = arith.constant 2.000000e-01 : f32
    %15 = vector.broadcast %cst_11 : f32 to vector<16x128xf32>
    %16 = arith.mulf %15, %14 : vector<16x128xf32>
    %17 = arith.maximumf %14, %16 : vector<16x128xf32>
    %18 = arith.truncf %17 : vector<16x128xf32> to vector<16x128xbf16>
    %c0_12 = arith.constant 0 : index
    %c0_13 = arith.constant 0 : index
    %19 = vector.load %arg6[%c0_12, %c0_13] : memref<128x128xbf16, #tpu.memory_space<vmem>>, vector<128x128xbf16>
    %cst_14 = arith.constant dense<0.000000e+00> : vector<16x128xf32>
    %20 = tpu.matmul %18, %19, %cst_14 {dimension_numbers = #tpu.dot_dimension_numbers<[1], [0], [0], [1], [0, 0, 1, 1], [], []>} : vector<16x128xbf16>, vector<128x128xbf16>, vector<16x128xf32> -> vector<16x128xf32>
    %c0_15 = arith.constant 0 : index
    %c0_16 = arith.constant 0 : index
    %21 = vector.load %arg7[%c0_15, %c0_16] : memref<1x128xf32, #tpu.memory_space<vmem>>, vector<1x128xf32>
    %22 = vector.broadcast %21 : vector<1x128xf32> to vector<16x128xf32>
    %23 = arith.addf %20, %22 : vector<16x128xf32>
    %cst_17 = arith.constant 2.000000e-01 : f32
    %24 = vector.broadcast %cst_17 : f32 to vector<16x128xf32>
    %25 = arith.mulf %24, %23 : vector<16x128xf32>
    %26 = arith.maximumf %23, %25 : vector<16x128xf32>
    %27 = arith.truncf %26 : vector<16x128xf32> to vector<16x128xbf16>
    %c0_18 = arith.constant 0 : index
    %c0_19 = arith.constant 0 : index
    %28 = vector.load %arg8[%c0_18, %c0_19] : memref<128x128xbf16, #tpu.memory_space<vmem>>, vector<128x128xbf16>
    %cst_20 = arith.constant dense<0.000000e+00> : vector<16x128xf32>
    %29 = tpu.matmul %27, %28, %cst_20 {dimension_numbers = #tpu.dot_dimension_numbers<[1], [0], [0], [1], [0, 0, 1, 1], [], []>} : vector<16x128xbf16>, vector<128x128xbf16>, vector<16x128xf32> -> vector<16x128xf32>
    %c0_21 = arith.constant 0 : index
    %c0_22 = arith.constant 0 : index
    %30 = vector.load %arg9[%c0_21, %c0_22] : memref<1x128xf32, #tpu.memory_space<vmem>>, vector<1x128xf32>
    %31 = vector.broadcast %30 : vector<1x128xf32> to vector<16x128xf32>
    %32 = arith.addf %29, %31 : vector<16x128xf32>
    %33 = math.tanh %32 : vector<16x128xf32>
    %34 = arith.truncf %33 : vector<16x128xf32> to vector<16x128xbf16>
    %c0_23 = arith.constant 0 : index
    %c0_24 = arith.constant 0 : index
    %35 = vector.load %arg10[%c0_23, %c0_24] : memref<16x128xbf16, #tpu.memory_space<vmem>>, vector<16x128xbf16>
    tpu.vector_store %arg10[%c0_23, %c0_24], %34 {strides = array<i32>} : memref<16x128xbf16, #tpu.memory_space<vmem>>, vector<16x128xbf16>,
    return
  }
  func.func @transform_0(%arg0: i32) -> (i32, i32) {
    %c0_i32 = arith.constant 0 : i32
    %c0_i32_0 = arith.constant 0 : i32
    return %arg0, %c0_i32 : i32, i32
  }
  func.func @transform_1(%arg0: i32) -> (i32, i32) {
    %c0_i32 = arith.constant 0 : i32
    %c0_i32_0 = arith.constant 0 : i32
    %c0_i32_1 = arith.constant 0 : i32
    return %c0_i32, %c0_i32_0 : i32, i32
  }
  func.func @transform_2(%arg0: i32) -> (i32, i32) {
    %c0_i32 = arith.constant 0 : i32
    %c0_i32_0 = arith.constant 0 : i32
    %c0_i32_1 = arith.constant 0 : i32
    return %c0_i32, %c0_i32_0 : i32, i32
  }
  func.func @transform_3(%arg0: i32) -> (i32, i32) {
    %c0_i32 = arith.constant 0 : i32
    %c0_i32_0 = arith.constant 0 : i32
    %c0_i32_1 = arith.constant 0 : i32
    return %c0_i32, %c0_i32_0 : i32, i32
  }
  func.func @transform_4(%arg0: i32) -> (i32, i32) {
    %c0_i32 = arith.constant 0 : i32
    %c0_i32_0 = arith.constant 0 : i32
    %c0_i32_1 = arith.constant 0 : i32
    return %c0_i32, %c0_i32_0 : i32, i32
  }
  func.func @transform_5(%arg0: i32) -> (i32, i32) {
    %c0_i32 = arith.constant 0 : i32
    %c0_i32_0 = arith.constant 0 : i32
    %c0_i32_1 = arith.constant 0 : i32
    return %c0_i32, %c0_i32_0 : i32, i32
  }
  func.func @transform_6(%arg0: i32) -> (i32, i32) {
    %c0_i32 = arith.constant 0 : i32
    %c0_i32_0 = arith.constant 0 : i32
    %c0_i32_1 = arith.constant 0 : i32
    return %c0_i32, %c0_i32_0 : i32, i32
  }
  func.func @transform_7(%arg0: i32) -> (i32, i32) {
    %c0_i32 = arith.constant 0 : i32
    %c0_i32_0 = arith.constant 0 : i32
    %c0_i32_1 = arith.constant 0 : i32
    return %c0_i32, %c0_i32_0 : i32, i32
  }
  func.func @transform_8(%arg0: i32) -> (i32, i32) {
    %c0_i32 = arith.constant 0 : i32
    %c0_i32_0 = arith.constant 0 : i32
    %c0_i32_1 = arith.constant 0 : i32
    return %c0_i32, %c0_i32_0 : i32, i32
  }
  func.func @transform_9(%arg0: i32) -> (i32, i32) {
    %c0_i32 = arith.constant 0 : i32
    %c0_i32_0 = arith.constant 0 : i32
    return %arg0, %c0_i32 : i32, i32
  }
}

</mosaic_0001>

<bundles_post_ra>
// kernel: generator_forward.1
= control target key start
LH: loop header
LB: loop body
LE: loop exit
PB: predicated region body
PF: predicated region fallthrough
CT: control target
= control target key end

     0   :  { %14 = vsyncpa [#allocation3], 0  ;;  %s1011_s0 = inlined_call_operand.vmem [shape: bf16[16,128], index: 0, kind: input, shape index: {}]   ;;  %s1012_s1 = inlined_call_operand.hbm [shape: bf16[128,128], index: 1, kind: input, shape index: {}]   ;;  %s1013_s2 = inlined_call_operand.vmem [shape: f32[1,128], index: 2, kind: input, shape index: {}]   ;;  %s1014_s3 = inlined_call_operand.hbm [shape: bf16[128,128], index: 3, kind: input, shape index: {}]   ;;  %s1015_s4 = inlined_call_operand.vmem [shape: f32[1,128], index: 4, kind: input, shape index: {}]   ;;  %s1016_s5 = inlined_call_operand.hbm [shape: bf16[128,128], index: 5, kind: input, shape index: {}]   ;;  %s1017_s6 = inlined_call_operand.vmem [shape: f32[1,128], index: 6, kind: input, shape index: {}]   ;;  %s1018_s7 = inlined_call_operand.hbm [shape: bf16[128,128], index: 7, kind: input, shape index: {}]   ;;  %s1019_s8 = inlined_call_operand.vmem [shape: f32[1,128], index: 8, kind: input, shape index: {}]   ;;  %s1020_s9 = inlined_call_operand.vmem [shape: bf16[16,128], index: 9, kind: output, shape index: {}]  }
   0x1   :  { %15 = vsyncpa [#allocation5], 0 }
   0x2   :  { %16 = vsyncpa [#allocation8], 0  ;;  %s871_s30 = smov [#allocation4]   ;;  %s872_s11 = smov [#allocation2]  }
   0x3   :  { %s38_s10 = sshll.u32 %s871_s30, 4  ;;  %s24_s12 = sshll.u32 %s872_s11, 4  ;;  %s39_s10 = int_to_ptr.vmem [resolvable:$true] %s38_s10  ;;  %s25_s12 = int_to_ptr.vmem [resolvable:$true] %s24_s12 }
   0x4   :  { %s793_s13 = scalar_lea.vmem %s39_s10, 1024  ;;  %p798_p1 = scmp.lt.s32.totalorder %s39_s10, %s39_s10 }
   0x5   :  { %p794_p0 = scmp.ne.s32.totalorder %s39_s10, %s793_s13  ;;  %p799_p2 = scmp.lt.s32.totalorder %s793_s13, %s793_s13 }
   0x7   :  { %p800_p3 = por %p799_p2, %p798_p1 }
   0x9   :  { %p801_p4 = pnand %p800_p3, %p794_p0 }
   0xb   :  { %804 = shalt.err (!%p801_p4)
}
   0xc   :  { %s873_s14 = smov 64   ;;  %s874_s15 = smov 4  }
   0xd   :  { %44 = dma.hbm_to_vmem [thread:$0]  %s1014_s3, 1024, %s39_s10, [#allocation5], %s873_s14, %s873_s14, %s874_s15  }
   0xe   :  { %s813_s18 = scalar_lea.vmem %s25_s12, 1024  ;;  %p818_p6 = scmp.lt.s32.totalorder %s25_s12, %s25_s12 }
   0xf   :  { %p814_p5 = scmp.ne.s32.totalorder %s25_s12, %s813_s18  ;;  %p819_p7 = scmp.lt.s32.totalorder %s813_s18, %s813_s18 }
  0x11   :  { %p820_p8 = por %p819_p7, %p818_p6 }
  0x13   :  { %p821_p9 = pnand %p820_p8, %p814_p5 }
  0x15   :  { %824 = shalt.err (!%p821_p9)
}
  0x16   :  { %30 = dma.hbm_to_vmem [thread:$0]  %s1012_s1, 1024, %s25_s12, [#allocation3], %s873_s14, %s873_s14, %s874_s15  }
  0x17   :  { %s875_s21 = smov [#allocation6]   ;;  %s876_s23 = smov [#allocation7]  }
  0x18   :  { %s52_s22 = sshll.u32 %s875_s21, 4  ;;  %s66_s24 = sshll.u32 %s876_s23, 4  ;;  %s53_s22 = int_to_ptr.vmem [resolvable:$true] %s52_s22  ;;  %s67_s24 = int_to_ptr.vmem [resolvable:$true] %s66_s24 }
  0x19   :  { %s833_s3 = scalar_lea.vmem %s53_s22, 1024  ;;  %p838_p11 = scmp.lt.s32.totalorder %s53_s22, %s53_s22 }
  0x1a   :  { %p834_p10 = scmp.ne.s32.totalorder %s53_s22, %s833_s3  ;;  %p839_p12 = scmp.lt.s32.totalorder %s833_s3, %s833_s3 }
  0x1c   :  { %p840_p13 = por %p839_p12, %p838_p11 }
  0x1e   :  { %p841_p0 = pnand %p840_p13, %p834_p10 }
  0x20   :  { %844 = shalt.err (!%p841_p0)
}
  0x21   :  { %58 = dma.hbm_to_vmem [thread:$0]  %s1016_s5, 1024, %s53_s22, [#allocation5], %s873_s14, %s873_s14, %s874_s15  }
  0x22   :  { %s853_s1 = scalar_lea.vmem %s67_s24, 1024  ;;  %p858_p2 = scmp.lt.s32.totalorder %s67_s24, %s67_s24 }
  0x23   :  { %p854_p1 = scmp.ne.s32.totalorder %s67_s24, %s853_s1  ;;  %p859_p3 = scmp.lt.s32.totalorder %s853_s1, %s853_s1 }
  0x25   :  { %p860_p4 = por %p859_p3, %p858_p2 }
  0x27   :  { %p861_p5 = pnand %p860_p4, %p854_p1 }
  0x29   :  { %864 = shalt.err (!%p861_p5)
}
  0x2a   :  { %72 = dma.hbm_to_vmem [thread:$0]  %s1018_s7, 1024, %s67_s24, [#allocation8], %s873_s14, %s873_s14, %s874_s15  }
  0x2b   :  { %865 = dma.done.wait [#allocation3], 1024  }
  0x2c   :  { %866 = vsyncadd [#allocation3], 4294966272 }
  0x2d   :  { %867 = dma.done.wait [#allocation5], 2048  }
  0x2e   :  { %868 = vsyncadd [#allocation5], 4294965248 }
  0x2f   :  { %869 = dma.done.wait [#allocation8], 1024  }
  0x30   :  { %870 = vsyncadd [#allocation8], 4294966272  ;;  %v877_v0 = vmov 0.0   ;;  %vm878_vm0 = vmmov 0   ;;  %v748_v1 = vld [vmem:[#allocation2 + $0x38] sm:$0xff]   ;;  %v749_v2 = vld [vmem:[#allocation2 + $0x30] sm:$0xff]  }
  0x31   :  { %660 = vmatprep.subr.bf16.mxu0 %v877_v0  ;;  %676 = vmatprep.mubr.msk.bf16.mxu0 %vm878_vm0, %v877_v0  ;;  %v750_v3 = vld [vmem:[#allocation2 + $0x28] sm:$0xff]   ;;  %v757_v4 = vld [vmem:[#allocation4 + $0x38] sm:$0xff]   ;;  %v751_v5 = vld [vmem:[#allocation2 + $0x20] sm:$0xff]  }
  0x32   :  { %680 = vmatprep.subr.bf16.mxu1 %v877_v0  ;;  %696 = vmatprep.mubr.msk.bf16.mxu1 %vm878_vm0, %v877_v0  ;;  %v758_v6 = vld [vmem:[#allocation4 + $0x30] sm:$0xff]   ;;  %v752_v7 = vld [vmem:[#allocation2 + $0x18] sm:$0xff]   ;;  %v759_v8 = vld [vmem:[#allocation4 + $0x28] sm:$0xff]  }
  0x33   :  { %661 = vmatpush3.bf16.msra.mxu0 %v748_v1  ;;  %681 = vmatpush3.bf16.msra.mxu1 %v757_v4  ;;  %v753_v9 = vld [vmem:[#allocation2 + $0x10] sm:$0xff]   ;;  %v760_v10 = vld [vmem:[#allocation4 + $0x20] sm:$0xff]   ;;  %v754_v11 = vld [vmem:[#allocation2 + $0x8] sm:$0xff]  }
  0x34   :  { %662 = vmatprep.subr.bf16.mxu0 %v877_v0  ;;  %682 = vmatprep.subr.bf16.mxu1 %v877_v0  ;;  %v761_v12 = vld [vmem:[#allocation4 + $0x18] sm:$0xff]   ;;  %v755_v13 = vld [vmem:[#allocation2] sm:$0xff]   ;;  %v762_v15 = vld [vmem:[#allocation4 + $0x10] sm:$0xff]  }
  0x35   :  { %v756_v14 = vld [vmem:[%s1011_s0] sm:$0xff]   ;;  %v763_v16 = vld [vmem:[#allocation4 + $0x8] sm:$0xff]   ;;  %v765_v18 = vld [vmem:[#allocation6 + $0x38] sm:$0xff]  }
  0x36   :  { %v764_v17 = vld [vmem:[#allocation4] sm:$0xff]   ;;  %v766_v19 = vld [vmem:[#allocation6 + $0x30] sm:$0xff]   ;;  %v767_v20 = vld [vmem:[#allocation6 + $0x28] sm:$0xff]  }
  0x37   :  { %663 = vmatpush3.bf16.msra.mxu0 %v749_v2  ;;  %683 = vmatpush3.bf16.msra.mxu1 %v758_v6  ;;  %v768_v21 = vld [vmem:[#allocation6 + $0x20] sm:$0xff]   ;;  %v769_v22 = vld [vmem:[#allocation6 + $0x18] sm:$0xff]   ;;  %v770_v35 = vld [vmem:[#allocation6 + $0x10] sm:$0xff]  }
  0x38   :  { %664 = vmatprep.subr.bf16.mxu0 %v877_v0  ;;  %684 = vmatprep.subr.bf16.mxu1 %v877_v0  ;;  %v578_v23 = vld [vmem:[%s1013_s2] ss:$0 sm:$0xff]  ;;  %v771_v36 = vld [vmem:[#allocation6 + $0x8] sm:$0xff]   ;;  %v773_v38 = vld [vmem:[#allocation7 + $0x38] sm:$0xff]  }
  0x39   :  { %v772_v37 = vld [vmem:[#allocation6] sm:$0xff]   ;;  %v774_v39 = vld [vmem:[#allocation7 + $0x30] sm:$0xff]   ;;  %v775_v40 = vld [vmem:[#allocation7 + $0x28] sm:$0xff]  }
  0x3a   :  { %v776_v41 = vld [vmem:[#allocation7 + $0x20] sm:$0xff]   ;;  %v777_v42 = vld [vmem:[#allocation7 + $0x18] sm:$0xff]   ;;  %v778_v55 = vld [vmem:[#allocation7 + $0x10] sm:$0xff]  }
  0x3b   :  { %665 = vmatpush3.bf16.msra.mxu0 %v750_v3  ;;  %685 = vmatpush3.bf16.msra.mxu1 %v759_v8  ;;  %v588_v43 = vld [vmem:[%s1015_s4] ss:$0 sm:$0xff]  ;;  %v779_v56 = vld [vmem:[#allocation7 + $0x8] sm:$0xff]  }
  0x3c   :  { %666 = vmatprep.subr.bf16.mxu0 %v877_v0  ;;  %686 = vmatprep.subr.bf16.mxu1 %v877_v0  ;;  %v780_v57 = vld [vmem:[#allocation7] sm:$0xff]  }
  0x3d   :  { %v597_v58 = vld [vmem:[%s1017_s6] ss:$0 sm:$0xff] }
  0x3f   :  { %667 = vmatpush3.bf16.msra.mxu0 %v751_v5  ;;  %687 = vmatpush3.bf16.msra.mxu1 %v760_v10 }
  0x40   :  { %668 = vmatprep.subr.bf16.mxu0 %v877_v0  ;;  %688 = vmatprep.subr.bf16.mxu1 %v877_v0 }
  0x43   :  { %669 = vmatpush3.bf16.msra.mxu0 %v752_v7  ;;  %689 = vmatpush3.bf16.msra.mxu1 %v761_v12 }
  0x44   :  { %670 = vmatprep.subr.bf16.mxu0 %v877_v0  ;;  %690 = vmatprep.subr.bf16.mxu1 %v877_v0 }
  0x47   :  { %671 = vmatpush3.bf16.msra.mxu0 %v753_v9  ;;  %691 = vmatpush3.bf16.msra.mxu1 %v762_v15 }
  0x48   :  { %672 = vmatprep.subr.bf16.mxu0 %v877_v0  ;;  %692 = vmatprep.subr.bf16.mxu1 %v877_v0 }
  0x4b   :  { %673 = vmatpush3.bf16.msra.mxu0 %v754_v11  ;;  %693 = vmatpush3.bf16.msra.mxu1 %v763_v16 }
  0x4c   :  { %674 = vmatprep.subr.bf16.mxu0 %v877_v0  ;;  %694 = vmatprep.subr.bf16.mxu1 %v877_v0 }
  0x4f   :  { %675 = vmatpush3.bf16.msra.mxu0 %v755_v13  ;;  %695 = vmatpush3.bf16.msra.mxu1 %v764_v17 }
  0x50   :  { %700 = vmatprep.subr.bf16.mxu0 %v877_v0  ;;  %720 = vmatprep.subr.bf16.mxu1 %v877_v0 }
  0x52   :  { %677 = vmatmul.mubr.bf16.vlgmr.msra.gmra.mxu0 %v756_v14 }
  0x53   :  { %716 = vmatprep.mubr.msk.bf16.mxu0 %vm878_vm0, %v877_v0  ;;  %701 = vmatpush3.bf16.msra.mxu0 %v765_v18 }
  0x54   :  { %702 = vmatprep.subr.bf16.mxu0 %v877_v0 }
  0x57   :  { %703 = vmatpush3.bf16.msra.mxu0 %v766_v19 }
  0x58   :  { %704 = vmatprep.subr.bf16.mxu0 %v877_v0 }
  0x5b   :  { %705 = vmatpush3.bf16.msra.mxu0 %v767_v20 }
  0x5c   :  { %706 = vmatprep.subr.bf16.mxu0 %v877_v0 }
  0x5f   :  { %707 = vmatpush3.bf16.msra.mxu0 %v768_v21 }
  0x60   :  { %708 = vmatprep.subr.bf16.mxu0 %v877_v0 }
  0x63   :  { %709 = vmatpush3.bf16.msra.mxu0 %v769_v22 }
  0x64   :  { %710 = vmatprep.subr.bf16.mxu0 %v877_v0 }
  0x67   :  { %711 = vmatpush3.bf16.msra.mxu0 %v770_v35 }
  0x68   :  { %712 = vmatprep.subr.bf16.mxu0 %v877_v0 }
  0x6b   :  { %713 = vmatpush3.bf16.msra.mxu0 %v771_v36 }
  0x6c   :  { %714 = vmatprep.subr.bf16.mxu0 %v877_v0 }
  0x6f   :  { %715 = vmatpush3.bf16.msra.mxu0 %v772_v37 }
 0x112   :  { %v201_v24 = vpop.f32.mrf.mxu0 }
 0x113   :  { %v202_v25 = vadd.f32 %v578_v23, %v201_v24 }
 0x114   :  { %v678_v26 = vpop.f32.mrf.mxu0 }
 0x115   :  { %v208_v28 = vmul.f32 0.2, %v202_v25 }
 0x116   :  { %v204_v27 = vpop.f32.mrf.mxu0 }
 0x117   :  { %v205_v29 = vadd.f32 %v578_v23, %v204_v27  ;;  %v210_v32 = vmax.f32 %v202_v25, %v208_v28 }
 0x118   :  { %v679_v30 = vpop.f32.mrf.mxu0 }
 0x119   :  { %v209_v31 = vmul.f32 0.2, %v205_v29 }
 0x11b   :  { %v211_v33 = vmax.f32 %v205_v29, %v209_v31 }
 0x11d   :  { %v212_v34 = vpack.c.bf16 %v211_v33, %v210_v32 }
 0x11f   :  { %697 = vmatmul.mubr.bf16.vlgmr.msra.gmra.mxu1 %v212_v34 }
 0x120   :  { %736 = vmatprep.mubr.msk.bf16.mxu1 %vm878_vm0, %v877_v0  ;;  %721 = vmatpush3.bf16.msra.mxu1 %v773_v38 }
 0x121   :  { %722 = vmatprep.subr.bf16.mxu1 %v877_v0 }
 0x124   :  { %723 = vmatpush3.bf16.msra.mxu1 %v774_v39 }
 0x125   :  { %724 = vmatprep.subr.bf16.mxu1 %v877_v0 }
 0x128   :  { %725 = vmatpush3.bf16.msra.mxu1 %v775_v40 }
 0x129   :  { %726 = vmatprep.subr.bf16.mxu1 %v877_v0 }
 0x12c   :  { %727 = vmatpush3.bf16.msra.mxu1 %v776_v41 }
 0x12d   :  { %728 = vmatprep.subr.bf16.mxu1 %v877_v0 }
 0x130   :  { %729 = vmatpush3.bf16.msra.mxu1 %v777_v42 }
 0x131   :  { %730 = vmatprep.subr.bf16.mxu1 %v877_v0 }
 0x134   :  { %731 = vmatpush3.bf16.msra.mxu1 %v778_v55 }
 0x135   :  { %732 = vmatprep.subr.bf16.mxu1 %v877_v0 }
 0x138   :  { %733 = vmatpush3.bf16.msra.mxu1 %v779_v56 }
 0x139   :  { %734 = vmatprep.subr.bf16.mxu1 %v877_v0  ;;  %v606_v0 = vld [vmem:[%s1019_s8] ss:$0 sm:$0xff] }
 0x13c   :  { %735 = vmatpush3.bf16.msra.mxu1 %v780_v57 }
 0x1df   :  { %v318_v44 = vpop.f32.mrf.mxu1 }
 0x1e0   :  { %v319_v45 = vadd.f32 %v588_v43, %v318_v44 }
 0x1e1   :  { %v698_v46 = vpop.f32.mrf.mxu1 }
 0x1e2   :  { %v325_v48 = vmul.f32 0.2, %v319_v45 }
 0x1e3   :  { %v321_v47 = vpop.f32.mrf.mxu1 }
 0x1e4   :  { %v322_v49 = vadd.f32 %v588_v43, %v321_v47  ;;  %v327_v52 = vmax.f32 %v319_v45, %v325_v48 }
 0x1e5   :  { %v699_v50 = vpop.f32.mrf.mxu1 }
 0x1e6   :  { %v326_v51 = vmul.f32 0.2, %v322_v49 }
 0x1e8   :  { %v328_v53 = vmax.f32 %v322_v49, %v326_v51 }
 0x1ea   :  { %v329_v54 = vpack.c.bf16 %v328_v53, %v327_v52 }
 0x1ec   :  { %717 = vmatmul.mubr.bf16.vlgmr.msra.gmra.mxu0 %v329_v54 }
 0x2ac   :  { %v435_v59 = vpop.f32.mrf.mxu0 }
 0x2ad   :  { %v436_v60 = vadd.f32 %v597_v58, %v435_v59 }
 0x2ae   :  { %v718_v61 = vpop.f32.mrf.mxu0 }
 0x2af   :  { %v442_v63 = vmul.f32 0.2, %v436_v60 }
 0x2b0   :  { %v438_v62 = vpop.f32.mrf.mxu0 }
 0x2b1   :  { %v439_v1 = vadd.f32 %v597_v58, %v438_v62  ;;  %v444_v4 = vmax.f32 %v436_v60, %v442_v63 }
 0x2b2   :  { %v719_v2 = vpop.f32.mrf.mxu0 }
 0x2b3   :  { %v443_v3 = vmul.f32 0.2, %v439_v1 }
 0x2b5   :  { %v445_v5 = vmax.f32 %v439_v1, %v443_v3 }
 0x2b7   :  { %v446_v6 = vpack.c.bf16 %v445_v5, %v444_v4 }
 0x2b9   :  { %737 = vmatmul.mubr.bf16.vlgmr.msra.gmra.mxu1 %v446_v6 }
 0x379   :  { %v552_v7 = vpop.f32.mrf.mxu1 }
 0x37a   :  { %v553_v8 = vadd.f32 %v606_v0, %v552_v7 }
 0x37b   :  { %v738_v9 = vpop.f32.mrf.mxu1 }
 0x37c   :  { %781 = vtanh.f32 %v553_v8 }
 0x37d   :  { %v555_v10 = vpop.f32.mrf.mxu1 }
 0x37e   :  { %v556_v11 = vadd.f32 %v606_v0, %v555_v10 }
 0x37f   :  { %v739_v12 = vpop.f32.mrf.mxu1 }
 0x380   :  { %783 = vtanh.f32 %v556_v11 }
 0x389   :  { %v782_v13 = vpop.eup %781 }
 0x38d   :  { %v784_v14 = vpop.eup %783 }
 0x38e   :  { %v622_v15 = vpack.c.bf16 %v784_v14, %v782_v13 }
 0x390   :  { %623 = vst [vmem:[%s1020_s9] sm:$0xff] %v622_v15  }
 0x391   :  { %575 = vsyncpa [#allocation3], 1 }
 0x392   :  { %576 = vsyncpa [#allocation5], 1 }
 0x393   :  { %577 = vsyncpa [#allocation8], 1 }

</bundles_post_ra>
